<compile_context>
chip_gen: v5e
topology: v5e:2x2
jax: 0.10.0
libtpu: 0.0.40
codegen_flags: <defaults>
</compile_context>

<pallas_src>
import functools

import jax
import jax.numpy as jnp
from jax.experimental import pallas as pl
from jax.experimental.pallas import tpu as pltpu


# ----------------------------------------------------------------------------
# Trace-time hardware introspection helpers.
# ----------------------------------------------------------------------------

def _device_kind():
    try:
        return jax.devices()[0].device_kind.lower()
    except Exception:
        return ""


def _is_v7():
    kind = _device_kind()
    return ("v7" in kind) or ("7x" in kind)


def _vmem_capacity_bytes():
    """Physical per-core VMEM, estimated conservatively."""
    kind = _device_kind()
    if _is_v7():
        kind_cap = 64 << 20
    elif ("v5" in kind) or ("v6" in kind):
        kind_cap = 128 << 20
    else:
        kind_cap = 64 << 20  # unknown generation: be conservative
    try:
        info_cap = int(pltpu.get_tpu_info().vmem_capacity_bytes)
        return min(info_cap, kind_cap)
    except Exception:
        return kind_cap


def _vmem_budget_bytes():
    # Leave headroom for compiler-internal scratch / double buffers:
    # ~48 MiB on v7x (64 MiB parts), ~96 MiB on v5e/v6e (128 MiB parts).
    return min(int(_vmem_capacity_bytes() * 3 // 4), 100 << 20)


def _mxu_m_width():
    kind = _device_kind()
    if ("v6" in kind) or _is_v7():
        return 256
    return 128  # v5e (and default)


def _round_up(n, m):
    return ((n + m - 1) // m) * m


def _sublane_pack(dtype):
    # f32 -> 8, bf16/f16 -> 16, int8/fp8 -> 32 sublane packing.
    return max(8, 32 // jnp.dtype(dtype).itemsize)


def _pick_tok_blk(n_tok):
    target = _mxu_m_width()
    # v7x has 2 TensorCores: prefer >= 2 parallel token tiles over a full
    # MXU M fill so the second core does not idle.
    if (_is_v7() and target == 256
            and pl.cdiv(n_tok, 256) < 2 and pl.cdiv(n_tok, 128) >= 2):
        target = 128
    return min(target, _round_up(n_tok, 8))


def _pick_vocab_tile(V, D, itemsize, pack, budget):
    # Size so the double-buffered table-tile stream fits in ~half the budget.
    cap = (budget // 2) // (2 * D * itemsize)
    cap = max(pack, (cap // pack) * pack)
    if cap >= V:
        return V  # single tile: block equals the full vocab dim (always legal)
    # Prefer a tile that divides V exactly (avoids padding the table in HBM).
    lo = max(pack, (cap // 2 // pack) * pack)
    for t in range(cap, lo - 1, -pack):
        if V % t == 0:
            return t
    return cap


# ----------------------------------------------------------------------------
# Kernels.
# ----------------------------------------------------------------------------

def _onehot_single_tile_kernel(ids_ref, emb_ref, out_ref, *, tv):
    """Whole vocab in one VMEM tile: direct one-hot matmul, no accumulator."""
    tok_blk = out_ref.shape[0]
    ids = ids_ref[...]                                           # (tok_blk, 1)
    col = jax.lax.broadcasted_iota(jnp.int32, (tok_blk, tv), 1)
    onehot = (col == ids).astype(emb_ref.dtype)                  # (tok_blk, tv)
    out_ref[...] = jnp.dot(onehot, emb_ref[...],
                           preferred_element_type=jnp.float32
                           ).astype(out_ref.dtype)


def _onehot_multi_tile_kernel(ids_ref, emb_ref, out_ref, *acc, tv):
    """Vocab tiled over a reduction grid axis.

    With no scratch (f32 output) the partial sums accumulate directly in the
    resident output block; otherwise a f32 scratch accumulator is used and
    cast to the output dtype on the last vocab step.
    """
    acc_ref = acc[0] if acc else out_ref
    vi = pl.program_id(1)

    @pl.when(vi == 0)
    def _():
        acc_ref[...] = jnp.zeros_like(acc_ref)

    tok_blk = out_ref.shape[0]
    # Fold the vocab-tile offset into the ids (cheap (tok_blk,1) op) so the
    # big (tok_blk, tv) iota/compare is identical on every grid step.
    ids_local = ids_ref[...] - vi * tv                           # (tok_blk, 1)
    col = jax.lax.broadcasted_iota(jnp.int32, (tok_blk, tv), 1)
    onehot = (col == ids_local).astype(emb_ref.dtype)            # (tok_blk, tv)
    acc_ref[...] += jnp.dot(onehot, emb_ref[...],
                            preferred_element_type=jnp.float32)

    if acc:
        @pl.when(vi == pl.num_programs(1) - 1)
        def _():
            out_ref[...] = acc_ref[...].astype(out_ref.dtype)


def _gather_kernel(ids_ref, table_ref, out_ref, buf_ref, sem_ref, *, tok_blk):
    """Per-row DMA gather from the HBM table into a VMEM staging buffer.

    ids_ref   : SMEM int32 (n_tok_pad,)  -- scalar-prefetched token ids
    table_ref : HBM (V, D)               -- full table (memory_space=pl.ANY)
    out_ref   : VMEM (tok_blk, D)        -- output tile for this grid step
    buf_ref   : VMEM (tok_blk, D)        -- gather staging buffer
    sem_ref   : DMA semaphores (tok_blk,)
    """
    base = pl.program_id(0) * tok_blk
    copies = []
    for j in range(tok_blk):
        row = ids_ref[base + j]
        copies.append(pltpu.make_async_copy(
            table_ref.at[pl.ds(row, 1), :],
            buf_ref.at[pl.ds(j, 1), :],
            sem_ref.at[j]))
    for c in copies:
        c.start()
    for c in copies:
        c.wait()
    out_ref[...] = buf_ref[...]


# ----------------------------------------------------------------------------
# Host-side wrappers.
# ----------------------------------------------------------------------------

def _onehot_path(flat_ids, emb_table, n_tok, max_vocab_tile=None):
    V, D = emb_table.shape
    dt = emb_table.dtype
    itemsize = jnp.dtype(dt).itemsize
    pack = _sublane_pack(dt)
    budget = _vmem_budget_bytes()

    tok_blk = _pick_tok_blk(n_tok)
    num_tok_tiles = pl.cdiv(n_tok, tok_blk)
    n_tok_pad = num_tok_tiles * tok_blk
    if n_tok_pad != n_tok:
        flat_ids = jnp.pad(flat_ids, (0, n_tok_pad - n_tok))
    ids_2d = flat_ids.reshape(n_tok_pad, 1)

    tv = _pick_vocab_tile(V, D, itemsize, pack, budget)
    if max_vocab_tile is not None and max_vocab_tile < tv:
        tv = max(pack, (int(max_vocab_tile) // pack) * pack)
    num_v_tiles = pl.cdiv(V, tv)
    v_pad = num_v_tiles * tv
    table = emb_table
    if v_pad != V:
        # Only reached for small tables (large vocabs use the gather path), so
        # this HBM pad copy is cheap; zero rows keep ragged-tile math exact.
        table = jnp.pad(emb_table, ((0, v_pad - V), (0, 0)))

    if num_v_tiles == 1:
        grid_spec = pltpu.PrefetchScalarGridSpec(
            num_scalar_prefetch=0,
            grid=(num_tok_tiles,),
            in_specs=[
                pl.BlockSpec((tok_blk, 1), lambda i: (i, 0)),
                pl.BlockSpec((tv, D), lambda i: (0, 0)),
            ],
            out_specs=pl.BlockSpec((tok_blk, D), lambda i: (i, 0)),
        )
        kernel = functools.partial(_onehot_single_tile_kernel, tv=tv)
        dims = ("parallel",)
        scratch_bytes = 0
    else:
        use_scratch = jnp.dtype(dt) != jnp.dtype(jnp.float32)
        scratch = [pltpu.VMEM((tok_blk, D), jnp.float32)] if use_scratch else []
        grid_spec = pltpu.PrefetchScalarGridSpec(
            num_scalar_prefetch=0,
            grid=(num_tok_tiles, num_v_tiles),
            in_specs=[
                pl.BlockSpec((tok_blk, 1), lambda i, k: (i, 0)),
                pl.BlockSpec((tv, D), lambda i, k: (k, 0)),
            ],
            out_specs=pl.BlockSpec((tok_blk, D), lambda i, k: (i, 0)),
            scratch_shapes=scratch,
        )
        kernel = functools.partial(_onehot_multi_tile_kernel, tv=tv)
        dims = ("parallel", "arbitrary")
        scratch_bytes = tok_blk * D * 4 if use_scratch else 0

    need = (2 * tv * D * itemsize          # double-buffered table tiles
            + 2 * tok_blk * 4              # ids tiles
            + 2 * tok_blk * D * itemsize   # output tiles
            + scratch_bytes
            + (2 << 20))                   # headroom
    vmem_limit = int(min(budget, max(need, 32 << 20)))

    cost = pl.CostEstimate(
        flops=2 * n_tok_pad * v_pad * D,
        transcendentals=0,
        bytes_accessed=(num_tok_tiles * v_pad * D * itemsize
                        + n_tok_pad * D * itemsize
                        + n_tok_pad * 4),
    )

    out_flat = pl.pallas_call(
        kernel,
        out_shape=jax.ShapeDtypeStruct((n_tok_pad, D), dt),
        grid_spec=grid_spec,
        compiler_params=pltpu.CompilerParams(
            dimension_semantics=dims,
            vmem_limit_bytes=vmem_limit,
        ),
        cost_estimate=cost,
    )(ids_2d, table)
    return out_flat[:n_tok]


def _gather_path(flat_ids, emb_table, n_tok):
    V, D = emb_table.shape
    dt = emb_table.dtype
    itemsize = jnp.dtype(dt).itemsize
    budget = _vmem_budget_bytes()

    # Moderate rows/step bounds the unrolled DMA count and the semaphore array.
    tok_blk = min(32, _round_up(n_tok, 8))
    num_tok_tiles = pl.cdiv(n_tok, tok_blk)
    n_tok_pad = num_tok_tiles * tok_blk

    # Clamp so every row DMA stays inside the table (torch treats OOB ids as
    # an error; clamping avoids an HBM out-of-bounds DMA fault here).
    ids = jnp.clip(flat_ids, 0, V - 1)
    if n_tok_pad != n_tok:
        ids = jnp.pad(ids, (0, n_tok_pad - n_tok))

    # TODO(synk): for very large token counts the scalar-prefetched id vector
    # lives entirely in SMEM; chunk the call at the wrapper level if needed.
    grid_spec = pltpu.PrefetchScalarGridSpec(
        num_scalar_prefetch=1,
        grid=(num_tok_tiles,),
        in_specs=[pl.BlockSpec(memory_space=pl.ANY)],      # table stays in HBM
        out_specs=pl.BlockSpec((tok_blk, D), lambda i, ids: (i, 0)),
        scratch_shapes=[pltpu.VMEM((tok_blk, D), dt),
                        pltpu.SemaphoreType.DMA((tok_blk,))],
    )

    need = 3 * tok_blk * D * itemsize + (2 << 20)
    vmem_limit = int(min(budget, max(need, 16 << 20)))

    out_flat = pl.pallas_call(
        functools.partial(_gather_kernel, tok_blk=tok_blk),
        out_shape=jax.ShapeDtypeStruct((n_tok_pad, D), dt),
        grid_spec=grid_spec,
        compiler_params=pltpu.CompilerParams(
            dimension_semantics=("parallel",),
            vmem_limit_bytes=vmem_limit,
        ),
    )(ids, emb_table)
    return out_flat[:n_tok]


def token_embedding(ids, emb_table, *, method=None, max_vocab_tile=None):
    """Pallas equivalent of torch.nn.Embedding(ids) (forward only).

    ids:       integer array, any shape (e.g. (B, S))
    emb_table: float (V, D)
    method:    None (auto) | "onehot" | "gather"
    returns:   ids.shape + (D,), dtype of emb_table
    """
    lead_shape = ids.shape
    flat_ids = ids.reshape(-1).astype(jnp.int32)
    n_tok = int(flat_ids.shape[0])
    V, D = emb_table.shape
    itemsize = jnp.dtype(emb_table.dtype).itemsize

    if method is None:
        table_bytes = V * D * itemsize
        small_table = (V <= 4096) and (2 * table_bytes <= _vmem_budget_bytes() // 2)
        method = "onehot" if small_table else "gather"

    if method == "onehot":
        out_flat = _onehot_path(flat_ids, emb_table, n_tok,
                                max_vocab_tile=max_vocab_tile)
    elif method == "gather":
        out_flat = _gather_path(flat_ids, emb_table, n_tok)
    else:
        raise ValueError(f"unknown method: {method!r}")

    return out_flat.reshape(lead_shape + (D,))


if __name__ == "__main__":
    # Small shapes consistent with the module: vocab=64, embedding_dim=128,
    # batch=2, seq=8.
    VOCAB = 64
    EMB_DIM = 128
    BATCH = 2
    SEQ = 8

    key = jax.random.PRNGKey(0)
    k_emb, k_ids = jax.random.split(key)

    # nn.Embedding default init is N(0, 1) on the weight table.
    emb_table = jax.random.normal(k_emb, (VOCAB, EMB_DIM), dtype=jnp.float32)
    token_ids = jax.random.randint(k_ids, (BATCH, SEQ), 0, VOCAB, dtype=jnp.int32)

    # Reference: plain JAX gather (== torch nn.Embedding forward).
    ref = jnp.take(emb_table, token_ids, axis=0)

    # 1) Auto path (small vocab -> single-tile one-hot MXU gather).
    out = jax.block_until_ready(token_embedding(token_ids, emb_table))
    assert out.shape == (BATCH, SEQ, EMB_DIM), out.shape
    assert out.dtype == jnp.float32, out.dtype
    assert jnp.allclose(out, ref, rtol=1e-6, atol=1e-6), \
        "one-hot (single tile) mismatch vs reference"

    # 2) Tiled-vocab one-hot path (accumulates directly in the f32 output).
    out_mt = jax.block_until_ready(
        token_embedding(token_ids, emb_table, method="onehot", max_vocab_tile=16))
    assert jnp.allclose(out_mt, ref, rtol=1e-6, atol=1e-6), \
        "one-hot (multi tile) mismatch vs reference"

    # 3) Large-vocab DMA gather path (forced on the same small inputs).
    out_g = jax.block_until_ready(
        token_embedding(token_ids, emb_table, method="gather"))
    assert jnp.allclose(out_g, ref, rtol=1e-6, atol=1e-6), \
        "DMA gather mismatch vs reference"

    print("KERNEL_OK")
</pallas_src>

<mosaic_0001>
module attributes {stable_mosaic.version = 11 : i64} {
  func.func @_onehot_single_tile_kernel(%arg0: i32, %arg1: memref<16x1xi32, #tpu.memory_space<vmem>>, %arg2: memref<64x128xf32, #tpu.memory_space<vmem>>, %arg3: memref<16x128xf32, #tpu.memory_space<vmem>>) attributes {dimension_semantics = [#tpu.dimension_semantics<parallel>], iteration_bounds = array<i64: 1>, scalar_prefetch = 0 : i64, scratch_operands = 0 : i64, tpu.core_type = #tpu.core_type<tc>, window_params = [{transform_indices = @transform_0, window_bounds = array<i64: 16, 1>}, {pipeline_mode = #tpu.pipeline_mode<synchronous>, transform_indices = @transform_1, window_bounds = array<i64: 64, 128>}, {transform_indices = @transform_2, window_bounds = array<i64: 16, 128>}]} {
    %c0 = arith.constant 0 : index
    %c0_0 = arith.constant 0 : index
    %0 = vector.load %arg1[%c0, %c0_0] : memref<16x1xi32, #tpu.memory_space<vmem>>, vector<16x1xi32>
    %1 = tpu.iota {dimensions = array<i32: 1>} : vector<16x64xi32>
    %2 = vector.broadcast %0 : vector<16x1xi32> to vector<16x64xi32>
    %3 = arith.cmpi eq, %1, %2 : vector<16x64xi32>
    %4 = arith.extui %3 : vector<16x64xi1> to vector<16x64xi32>
    %5 = arith.sitofp %4 : vector<16x64xi32> to vector<16x64xf32>
    %c0_1 = arith.constant 0 : index
    %c0_2 = arith.constant 0 : index
    %6 = vector.load %arg2[%c0_1, %c0_2] : memref<64x128xf32, #tpu.memory_space<vmem>>, vector<64x128xf32>
    %cst = arith.constant dense<0.000000e+00> : vector<16x128xf32>
    %7 = tpu.matmul %5, %6, %cst {dimension_numbers = #tpu.dot_dimension_numbers<[1], [0], [0], [1], [0, 0, 1, 1], [], []>} : vector<16x64xf32>, vector<64x128xf32>, vector<16x128xf32> -> vector<16x128xf32>
    %c0_3 = arith.constant 0 : index
    %c0_4 = arith.constant 0 : index
    %8 = vector.load %arg3[%c0_3, %c0_4] : memref<16x128xf32, #tpu.memory_space<vmem>>, vector<16x128xf32>
    tpu.vector_store %arg3[%c0_3, %c0_4], %7 {strides = array<i32>} : memref<16x128xf32, #tpu.memory_space<vmem>>, vector<16x128xf32>,
    return
  }
  func.func @transform_0(%arg0: i32) -> (i32, i32) {
    %c0_i32 = arith.constant 0 : i32
    %c0_i32_0 = arith.constant 0 : i32
    return %arg0, %c0_i32 : i32, i32
  }
  func.func @transform_1(%arg0: i32) -> (i32, i32) {
    %c0_i32 = arith.constant 0 : i32
    %c0_i32_0 = arith.constant 0 : i32
    %c0_i32_1 = arith.constant 0 : i32
    return %c0_i32, %c0_i32_0 : i32, i32
  }
  func.func @transform_2(%arg0: i32) -> (i32, i32) {
    %c0_i32 = arith.constant 0 : i32
    %c0_i32_0 = arith.constant 0 : i32
    return %arg0, %c0_i32 : i32, i32
  }
}

</mosaic_0001>

<bundles_post_ra>
// kernel: tpu_custom_call.1
= control target key start
LH: loop header
LB: loop body
LE: loop exit
PB: predicated region body
PF: predicated region fallthrough
CT: control target
= control target key end

     0   :  { %7 = vsyncpa [#allocation3], 0  ;;  %s213_s0 = inlined_call_operand.vmem [shape: s32[16,1], index: 0, kind: input, shape index: {}]   ;;  %s214_s1 = inlined_call_operand.hbm [shape: f32[64,128], index: 1, kind: input, shape index: {}]   ;;  %s215_s2 = inlined_call_operand.hbm [shape: f32[16,128], index: 2, kind: output, shape index: {}]  }
   0x1   :  { %8 = vsyncpa [#allocation4], 0  ;;  %s15_s11 = sshll.u32 %s214_s1, 4  ;;  %s174_s12 = smov [#allocation2]   ;;  %s16_s11 = int_to_ptr.hbm [resolvable:$true] %s15_s11 }
   0x2   :  { %s17_s13 = sshll.u32 %s174_s12, 4  ;;  %s175_s14 = smov 128   ;;  %s18_s13 = int_to_ptr.vmem [resolvable:$true] %s17_s13 }
   0x3   :  { %s176_s15 = smov 8  }
   0x4   :  { %23 = dma.hbm_to_vmem [thread:$0]  %s16_s11, 1024, %s18_s13, [#allocation3], %s175_s14, %s175_s14, %s176_s15  }
   0x5   :  { %170 = dma.done.wait [#allocation3], 1024  }
   0x6   :  { %171 = vsyncadd [#allocation3], 4294966272  ;;  %v177_v0 = vmov 0   ;;  %v28_v1 = vld [vmem:[%s213_s0] sm:$0xff]  ;;  %v51_v2 = vld [vmem:[#allocation2 + $0x38] sm:$0xff]  ;;  %v30_v11 = vlaneseq  ;;  %vm52_vm0 = vcmask 523264  }
   0x7   :  { %121 = vset.pattern.permute.xlu0 %v177_v0  ;;  %67 = vmatpush.msra.mxu0 %v51_v2  ;;  %v50_v3 = vld [vmem:[#allocation2 + $0x30] sm:$0xff]  ;;  %v49_v4 = vld [vmem:[#allocation2 + $0x28] sm:$0xff]  ;;  %v48_v5 = vld [vmem:[#allocation2 + $0x20] sm:$0xff]  ;;  %v178_v14 = vmov 0.0   ;;  %s90_s22 = sshll.u32 %s215_s2, 4  ;;  %s91_s22 = int_to_ptr.hbm [resolvable:$true] %s90_s22 }
   0x8   :  { %33 = vperm.xlu0 %121, %v28_v1   ;;  %107 = vmatpush.msra.mxu1 %v51_v2  ;;  %v29_v6 = vld [vmem:[%s213_s0 + $0x8] sm:$0xff]  ;;  %v47_v7 = vld [vmem:[#allocation2 + $0x18] sm:$0xff]  ;;  %v46_v8 = vld [vmem:[#allocation2 + $0x10] sm:$0xff]  ;;  %v31_v12 = vand.u32 127, %v30_v11  ;;  %s179_s0 = smov [#allocation5]  }
   0x9   :  { %68 = vmatpush.msra.mxu0 %v50_v3  ;;  %v45_v9 = vld [vmem:[#allocation2 + $0x8] sm:$0xff]  ;;  %v44_v10 = vld [vmem:[#allocation2] sm:$0xff]  ;;  %s88_s19 = sshll.u32 %s179_s0, 4  ;;  %s89_s19 = int_to_ptr.vmem [resolvable:$true] %s88_s19 }
   0xa   :  { %108 = vmatpush.msra.mxu1 %v50_v3 }
   0xb   :  { %69 = vmatpush.msra.mxu0 %v49_v4 }
   0xc   :  { %109 = vmatpush.msra.mxu1 %v49_v4 }
   0xd   :  { %70 = vmatpush.msra.mxu0 %v48_v5 }
   0xe   :  { %110 = vmatpush.msra.mxu1 %v48_v5 }
   0xf   :  { %71 = vmatpush.msra.mxu0 %v47_v7 }
  0x10   :  { %36 = vperm.xlu0 %121, %v29_v6   ;;  %111 = vmatpush.msra.mxu1 %v47_v7 }
  0x11   :  { %72 = vmatpush.msra.mxu0 %v46_v8 }
  0x12   :  { %112 = vmatpush.msra.mxu1 %v46_v8 }
  0x13   :  { %73 = vmatpush.msra.mxu0 %v45_v9 }
  0x14   :  { %113 = vmatpush.msra.mxu1 %v45_v9 }
  0x15   :  { %74 = vmatpush.msra.mxu0 %v44_v10 }
  0x16   :  { %114 = vmatpush.msra.mxu1 %v44_v10 }
  0x7a   :  { %v34_v13 = vpop.permute.xlu0 %33 }
  0x7b   :  { %vm38_vm1 = vcmp.eq.s32.totalorder %v31_v12, %v34_v13 }
  0x7c   :  { %v103_v15 = vsel %vm38_vm1, 1.0, %v178_v14 }
  0x7d   :  { %105 = vmatmul.msk.f32.vlgmr.msra.gmra.mxu0 %vm52_vm0, %v103_v15 }
  0x82   :  { %v37_v16 = vpop.permute.xlu0 %36 }
  0x83   :  { %vm39_vm2 = vcmp.eq.s32.totalorder %v31_v12, %v37_v16 }
  0x84   :  { %v104_v17 = vsel %vm39_vm2, 1.0, %v178_v14 }
  0x85   :  { %106 = vmatmul.msk.f32.vlgmr.msra.gmra.mxu1 %vm52_vm0, %v104_v17 }
  0xfa   :  { %v76_v18 = vpop.f32.mrf.mxu0 }
  0xfb   :  { %82 = vst [vmem:[#allocation5] sm:$0xff] %v76_v18 }
 0x102   :  { %v79_v19 = vpop.f32.mrf.mxu1 }
 0x103   :  { %83 = vst [vmem:[#allocation5 + $0x8] sm:$0xff] %v79_v19 }
 0x104   :  { %96 = dma.vmem_to_hbm [thread:$0]  %s89_s19, 256, %s91_s22, [#allocation4], %s175_s14, %s175_s14, %s176_s15  }
 0x105   :  { %172 = dma.done.wait [#allocation4], 256  }
 0x106   :  { %173 = vsyncadd [#allocation4], 4294967040 }
 0x107   :  { %101 = vsyncpa [#allocation3], 1 }
 0x108   :  { %102 = vsyncpa [#allocation4], 1 }

</bundles_post_ra>
